<compile_context>
chip_gen: v7x
topology: tpu7x:2x2x1
jax: 0.10.0
libtpu: 0.0.40
codegen_flags: <defaults>
</compile_context>

<pallas_src>
import jax
import jax.numpy as jnp
from jax import lax
from jax.experimental import pallas as pl
from jax.experimental.pallas import tpu as pltpu

# ---- module configuration (QueryGenerationModule('c', ...)) -----------------
IN_CHANNEL = 4
QUERY_NUM = 8                                                      # N
QUERY_BASE = 0.5
QUERY_CHANNEL_TOTAL = 64
QC = QUERY_CHANNEL_TOTAL - int(QUERY_CHANNEL_TOTAL * QUERY_BASE)   # 32 (learned part)
QC_CAT = int(QUERY_CHANNEL_TOTAL * QUERY_BASE)                     # 32 (base_fea_cat)
H = W = 16
B = 2
ROWS = B * QUERY_NUM                                               # 16 flattened (b, n) rows

# Packed parameter-slab row offsets (all multiples of 8 sublanes -> free slices).
OFF_BQ = 0                                                         # q_g bias, tiled (16 rows)
OFF_ERES = ROWS                                                    # residual e, tiled (16 rows)
OFF_K = 2 * ROWS                                                   # k = k_g(e)       (8 rows)
OFF_EWO = 2 * ROWS + QUERY_NUM                                     # e @ wo_f + bo_f  (8 rows)
SLAB_ROWS = 2 * ROWS + 2 * QUERY_NUM                               # 48


def qgen_kernel(x_ref, wq_ref, p_ref, out_ref):
    # x_ref:   (B, C_in, H*W)   input with spatial dims flattened
    # wq_ref:  (B*N, C_in*QC)   lane-dense BN-folded q_g weight (row r = b*N + n)
    # p_ref:   (48, QC)         packed parameter slab (see OFF_* constants)
    # out_ref: (B*N, QC)        learned part of the queries, row r = b*N + n
    f32 = jnp.float32

    # AdaptiveAvgPool2d((1,1)) -> mean over the flattened spatial dim.
    pooled = jnp.mean(x_ref[...], axis=-1)                               # (B, C_in)

    # Replicate each pooled batch row N times (row r = b*N + n) with a VPU
    # select on a row-iota mask (B == 2): no MXU round trip.
    row = lax.broadcasted_iota(jnp.int32, (ROWS, IN_CHANNEL), 0)
    p0 = jnp.broadcast_to(pooled[0:1, :], (ROWS, IN_CHANNEL))
    p1 = jnp.broadcast_to(pooled[1:2, :], (ROWS, IN_CHANNEL))
    pooled_rep = jnp.where(row < QUERY_NUM, p0, p1)                      # (B*N, C_in)

    # q_g (Linear + folded BN + ReLU) for all (b, n) rows at once: one
    # broadcast-FMA per input channel against a static 32-lane weight slice.
    q = p_ref[OFF_BQ:OFF_BQ + ROWS, :]                                   # (B*N, QC)
    for i in range(IN_CHANNEL):
        q = q + pooled_rep[:, i:i + 1] * wq_ref[:, i * QC:(i + 1) * QC]
    q = jnp.maximum(q, 0.0)

    # logits[b*N+n, m] = q[b,n,:] . k[m,:]  (contract last dims, no transpose).
    k = p_ref[OFF_K:OFF_K + QUERY_NUM, :]                                # (N, QC)
    logits = lax.dot_general(q, k, (((1,), (1,)), ((), ())),
                             preferred_element_type=f32)                 # (B*N, N)

    # Softmax over m (exact normalization: rows sum to 1, which the bias fold
    # into `ewo` below relies on).
    logits = logits - jnp.max(logits, axis=-1, keepdims=True)
    pexp = jnp.exp(logits)
    attn = pexp / jnp.sum(pexp, axis=-1, keepdims=True)                  # (B*N, N)

    # query -> out_g, pre-folded:  (attn @ e) @ wo_f + bo_f == attn @ (e@wo_f + bo_f).
    ewo = p_ref[OFF_EWO:OFF_EWO + QUERY_NUM, :]                          # (N, QC)
    o = jnp.dot(attn, ewo, preferred_element_type=f32)                   # (B*N, QC)

    # ReLU, then residual add of the base features.
    out_ref[...] = jnp.maximum(o, 0.0) + p_ref[OFF_ERES:OFF_ERES + ROWS, :]


def init_params(key):
    """Deterministic synthetic parameters; BN given as eval-mode scale/shift."""
    ks = jax.random.split(key, 11)
    M = QUERY_NUM * QC

    def bn_fold(k, n):
        k1, k2, k3, k4 = jax.random.split(k, 4)
        gamma = 1.0 + 0.1 * jax.random.normal(k1, (n,), jnp.float32)
        beta = 0.1 * jax.random.normal(k2, (n,), jnp.float32)
        mean = 0.05 * jax.random.normal(k3, (n,), jnp.float32)
        var = 1.0 + 0.1 * jax.random.uniform(k4, (n,), jnp.float32)
        scale = gamma / jnp.sqrt(var + 1e-5)
        shift = beta - mean * scale
        return scale, shift

    e = jax.random.normal(ks[0], (QUERY_NUM, QC), jnp.float32)          # base_features
    e_cat = jax.random.normal(ks[1], (QUERY_NUM, QC_CAT), jnp.float32)  # base_fea_cat
    wq = 0.1 * jax.random.normal(ks[2], (IN_CHANNEL, M), jnp.float32)
    bq = 0.1 * jax.random.normal(ks[3], (M,), jnp.float32)
    sq, tq = bn_fold(ks[4], M)
    wk = 0.1 * jax.random.normal(ks[5], (QC, QC), jnp.float32)
    bk = 0.1 * jax.random.normal(ks[6], (QC,), jnp.float32)
    sk, tk = bn_fold(ks[7], QC)
    wo = 0.1 * jax.random.normal(ks[8], (QC, QC), jnp.float32)
    bo = 0.1 * jax.random.normal(ks[9], (QC,), jnp.float32)
    so, to = bn_fold(ks[10], QC)
    return dict(e=e, e_cat=e_cat, wq=wq, bq=bq, sq=sq, tq=tq,
                wk=wk, bk=bk, sk=sk, tk=tk, wo=wo, bo=bo, so=so, to=to)


def fold_params(P, b):
    """Parameter-only folding, hoisted out of the per-forward jit path."""
    # Fold eval-mode BN (scale s, shift t) into the preceding Linear:
    #   relu((x@W + bias)*s + t) == relu(x@(W*s) + (bias*s + t))
    wq_f = P["wq"] * P["sq"][None, :]                          # (C_in, N*QC)
    bq_f = P["bq"] * P["sq"] + P["tq"]                         # (N*QC,)
    wo_f = P["wo"] * P["so"][None, :]                          # (QC, QC)
    bo_f = P["bo"] * P["so"] + P["to"]                         # (QC,)

    # Lane-dense q_g weight: row r = b*N + n holds [w_chan0 | w_chan1 | ... ].
    wq_rows = jnp.transpose(wq_f.reshape(IN_CHANNEL, QUERY_NUM, QC),
                            (1, 0, 2)).reshape(QUERY_NUM, IN_CHANNEL * QC)
    wq_rows = jnp.tile(wq_rows, (b, 1))                        # (B*N, C_in*QC) = (16, 128)

    # k_g depends only on parameters -> precompute k = relu(BN(Linear(e))).
    k = jnp.maximum((P["e"] @ P["wk"] + P["bk"]) * P["sk"] + P["tk"], 0.0)   # (N, QC)

    # Pre-fold output projection + bias into the base features (softmax rows sum to 1):
    #   (attn @ e) @ wo_f + bo_f == attn @ (e @ wo_f + bo_f)
    ewo = P["e"] @ wo_f + bo_f[None, :]                        # (N, QC)

    bq_flat = jnp.tile(bq_f.reshape(QUERY_NUM, QC), (b, 1))    # (B*N, QC)
    e_res = jnp.tile(P["e"], (b, 1))                           # (B*N, QC)

    # One packed (48, QC) parameter slab; every section starts at a multiple of
    # 8 sublanes so the kernel's static slices are free.
    slab = jnp.concatenate([bq_flat, e_res, k, ewo], axis=0)   # (48, QC)
    assert slab.shape == (SLAB_ROWS, QC)
    return dict(wq_rows=wq_rows, slab=slab, e_cat=P["e_cat"])


def query_generation_forward(x, folded):
    b, cin, h, w = x.shape
    assert b == B and cin == IN_CHANNEL
    x_flat = x.reshape(b, cin, h * w)

    vspec = pl.BlockSpec(memory_space=pltpu.MemorySpace.VMEM)
    out_flat = pl.pallas_call(
        qgen_kernel,
        out_shape=jax.ShapeDtypeStruct((b * QUERY_NUM, QC), jnp.float32),
        in_specs=[vspec, vspec, vspec],
        out_specs=vspec,
        cost_estimate=pl.CostEstimate(flops=30_000, transcendentals=128,
                                      bytes_accessed=25_000),
        # NOTE(v7x): for many independent module instances, add a leading
        # "parallel" grid axis over instances (dimension_semantics) to engage
        # both TensorCores and amortize the per-call launch/DMA overhead; a
        # single instance this small stays gridless and fully VMEM-resident.
    )(x_flat, folded["wq_rows"], folded["slab"])

    query = out_flat.reshape(b, QUERY_NUM, QC)                 # free row-major reshape
    cat = jnp.broadcast_to(folded["e_cat"][None], (b, QUERY_NUM, QC_CAT))
    return jnp.concatenate([query, cat], axis=-1)              # (B, N, QC + QC_CAT)


def ref_forward(x_flat, P):
    """Pure-JAX reference of QueryGeneration_channel.forward (eval-mode BN, unfolded)."""
    pooled = jnp.mean(x_flat, axis=-1)
    q = pooled @ P["wq"] + P["bq"]
    q = jnp.maximum(q * P["sq"] + P["tq"], 0.0).reshape(B, QUERY_NUM, QC)
    k = jnp.maximum((P["e"] @ P["wk"] + P["bk"]) * P["sk"] + P["tk"], 0.0)
    wgt = jax.nn.softmax(jnp.einsum('bnc,mc->bnm', q, k), axis=-1)
    qry = jnp.einsum('bnm,mc->bnc', wgt, P["e"])
    o = jnp.maximum((qry @ P["wo"] + P["bo"]) * P["so"] + P["to"], 0.0)
    o = o + P["e"][None]
    cat = jnp.broadcast_to(P["e_cat"][None], (B, QUERY_NUM, QC_CAT))
    return jnp.concatenate([o, cat], axis=-1)


if __name__ == "__main__":
    key = jax.random.PRNGKey(0)
    kx, kp = jax.random.split(key)
    x = jax.random.normal(kx, (B, IN_CHANNEL, H, W), jnp.float32)   # NCHW, like PyTorch
    params = init_params(kp)

    folded = fold_params(params, B)                 # hoisted: computed once per parameter set
    fwd = jax.jit(query_generation_forward)
    out = jax.block_until_ready(fwd(x, folded))

    ref = ref_forward(x.reshape(B, IN_CHANNEL, H * W), params)
    assert out.shape == (B, QUERY_NUM, QC + QC_CAT), out.shape
    # Tolerance covers f32 rounding from the wrapper-side BN / e@wo folding.
    if not jnp.allclose(out, ref, atol=1e-3, rtol=1e-3):
        raise SystemExit("Pallas kernel does not match reference")
    print("KERNEL_OK")
</pallas_src>

<mosaic_0001>
module attributes {stable_mosaic.version = 11 : i64} {
  func.func @qgen_kernel(%arg0: memref<2x4x256xf32, #tpu.memory_space<vmem>>, %arg1: memref<16x128xf32, #tpu.memory_space<vmem>>, %arg2: memref<48x32xf32, #tpu.memory_space<vmem>>, %arg3: memref<16x32xf32, #tpu.memory_space<vmem>>) attributes {dimension_semantics = [], scalar_prefetch = 0 : i64, scratch_operands = 0 : i64, tpu.core_type = #tpu.core_type<tc>} {
    %c0 = arith.constant 0 : index
    %c0_0 = arith.constant 0 : index
    %c0_1 = arith.constant 0 : index
    %0 = vector.load %arg0[%c0, %c0_0, %c0_1] : memref<2x4x256xf32, #tpu.memory_space<vmem>>, vector<2x4x256xf32>
    %cst = arith.constant dense<0.000000e+00> : vector<2x4xf32>
    %1 = vector.multi_reduction <add>, %0, %cst [2] : vector<2x4x256xf32> to vector<2x4xf32>
    %cst_2 = arith.constant 2.560000e+02 : f32
    %2 = vector.broadcast %cst_2 : f32 to vector<2x4xf32>
    %3 = arith.divf %1, %2 : vector<2x4xf32>
    %4 = tpu.iota {dimensions = array<i32: 0>} : vector<16x4xi32>
    %5 = vector.extract_strided_slice %3 {offsets = [0, 0], sizes = [1, 4], strides = [1, 1]} : vector<2x4xf32> to vector<1x4xf32>
    %6 = vector.shape_cast %5 : vector<1x4xf32> to vector<1x4xf32>
    %7 = vector.broadcast %6 : vector<1x4xf32> to vector<16x4xf32>
    %8 = vector.extract_strided_slice %3 {offsets = [1, 0], sizes = [1, 4], strides = [1, 1]} : vector<2x4xf32> to vector<1x4xf32>
    %9 = vector.shape_cast %8 : vector<1x4xf32> to vector<1x4xf32>
    %10 = vector.broadcast %9 : vector<1x4xf32> to vector<16x4xf32>
    %c8_i32 = arith.constant 8 : i32
    %11 = vector.broadcast %c8_i32 : i32 to vector<16x4xi32>
    %12 = arith.cmpi slt, %4, %11 : vector<16x4xi32>
    %13 = arith.select %12, %7, %10 : vector<16x4xi1>, vector<16x4xf32>
    %c0_3 = arith.constant 0 : index
    %c0_4 = arith.constant 0 : index
    %14 = vector.load %arg2[%c0_3, %c0_4] : memref<48x32xf32, #tpu.memory_space<vmem>>, vector<16x32xf32>
    %15 = vector.extract_strided_slice %13 {offsets = [0, 0], sizes = [16, 1], strides = [1, 1]} : vector<16x4xf32> to vector<16x1xf32>
    %c0_5 = arith.constant 0 : index
    %c0_6 = arith.constant 0 : index
    %16 = vector.load %arg1[%c0_5, %c0_6] : memref<16x128xf32, #tpu.memory_space<vmem>>, vector<16x32xf32>
    %17 = vector.broadcast %15 : vector<16x1xf32> to vector<16x32xf32>
    %18 = arith.mulf %17, %16 : vector<16x32xf32>
    %19 = arith.addf %14, %18 : vector<16x32xf32>
    %20 = vector.extract_strided_slice %13 {offsets = [0, 1], sizes = [16, 1], strides = [1, 1]} : vector<16x4xf32> to vector<16x1xf32>
    %c0_7 = arith.constant 0 : index
    %c32 = arith.constant 32 : index
    %21 = vector.load %arg1[%c0_7, %c32] : memref<16x128xf32, #tpu.memory_space<vmem>>, vector<16x32xf32>
    %22 = vector.broadcast %20 : vector<16x1xf32> to vector<16x32xf32>
    %23 = arith.mulf %22, %21 : vector<16x32xf32>
    %24 = arith.addf %19, %23 : vector<16x32xf32>
    %25 = vector.extract_strided_slice %13 {offsets = [0, 2], sizes = [16, 1], strides = [1, 1]} : vector<16x4xf32> to vector<16x1xf32>
    %c0_8 = arith.constant 0 : index
    %c64 = arith.constant 64 : index
    %26 = vector.load %arg1[%c0_8, %c64] : memref<16x128xf32, #tpu.memory_space<vmem>>, vector<16x32xf32>
    %27 = vector.broadcast %25 : vector<16x1xf32> to vector<16x32xf32>
    %28 = arith.mulf %27, %26 : vector<16x32xf32>
    %29 = arith.addf %24, %28 : vector<16x32xf32>
    %30 = vector.extract_strided_slice %13 {offsets = [0, 3], sizes = [16, 1], strides = [1, 1]} : vector<16x4xf32> to vector<16x1xf32>
    %c0_9 = arith.constant 0 : index
    %c96 = arith.constant 96 : index
    %31 = vector.load %arg1[%c0_9, %c96] : memref<16x128xf32, #tpu.memory_space<vmem>>, vector<16x32xf32>
    %32 = vector.broadcast %30 : vector<16x1xf32> to vector<16x32xf32>
    %33 = arith.mulf %32, %31 : vector<16x32xf32>
    %34 = arith.addf %29, %33 : vector<16x32xf32>
    %cst_10 = arith.constant 0.000000e+00 : f32
    %35 = vector.broadcast %cst_10 : f32 to vector<16x32xf32>
    %36 = arith.maximumf %34, %35 : vector<16x32xf32>
    %c32_11 = arith.constant 32 : index
    %c0_12 = arith.constant 0 : index
    %37 = vector.load %arg2[%c32_11, %c0_12] : memref<48x32xf32, #tpu.memory_space<vmem>>, vector<8x32xf32>
    %cst_13 = arith.constant dense<0.000000e+00> : vector<16x8xf32>
    %38 = tpu.matmul %36, %37, %cst_13 {dimension_numbers = #tpu.dot_dimension_numbers<[1], [1], [0], [0], [0, 0, 1, 0], [], []>} : vector<16x32xf32>, vector<8x32xf32>, vector<16x8xf32> -> vector<16x8xf32>
    %cst_14 = arith.constant dense<0xFF800000> : vector<16xf32>
    %39 = vector.multi_reduction <maximumf>, %38, %cst_14 [1] : vector<16x8xf32> to vector<16xf32>
    %40 = vector.shape_cast %39 : vector<16xf32> to vector<16x1xf32>
    %41 = vector.broadcast %40 : vector<16x1xf32> to vector<16x8xf32>
    %42 = arith.subf %38, %41 : vector<16x8xf32>
    %43 = math.exp %42 : vector<16x8xf32>
    %cst_15 = arith.constant dense<0.000000e+00> : vector<16xf32>
    %44 = vector.multi_reduction <add>, %43, %cst_15 [1] : vector<16x8xf32> to vector<16xf32>
    %45 = vector.shape_cast %44 : vector<16xf32> to vector<16x1xf32>
    %46 = vector.broadcast %45 : vector<16x1xf32> to vector<16x8xf32>
    %47 = arith.divf %43, %46 : vector<16x8xf32>
    %c40 = arith.constant 40 : index
    %c0_16 = arith.constant 0 : index
    %48 = vector.load %arg2[%c40, %c0_16] : memref<48x32xf32, #tpu.memory_space<vmem>>, vector<8x32xf32>
    %cst_17 = arith.constant dense<0.000000e+00> : vector<16x32xf32>
    %49 = tpu.matmul %47, %48, %cst_17 {dimension_numbers = #tpu.dot_dimension_numbers<[1], [0], [0], [1], [0, 0, 1, 1], [], []>} : vector<16x8xf32>, vector<8x32xf32>, vector<16x32xf32> -> vector<16x32xf32>
    %cst_18 = arith.constant 0.000000e+00 : f32
    %50 = vector.broadcast %cst_18 : f32 to vector<16x32xf32>
    %51 = arith.maximumf %49, %50 : vector<16x32xf32>
    %c16 = arith.constant 16 : index
    %c0_19 = arith.constant 0 : index
    %52 = vector.load %arg2[%c16, %c0_19] : memref<48x32xf32, #tpu.memory_space<vmem>>, vector<16x32xf32>
    %53 = arith.addf %51, %52 : vector<16x32xf32>
    %c0_20 = arith.constant 0 : index
    %c0_21 = arith.constant 0 : index
    %54 = vector.load %arg3[%c0_20, %c0_21] : memref<16x32xf32, #tpu.memory_space<vmem>>, vector<16x32xf32>
    tpu.vector_store %arg3[%c0_20, %c0_21], %53 {strides = array<i32>} : memref<16x32xf32, #tpu.memory_space<vmem>>, vector<16x32xf32>,
    return
  }
}

</mosaic_0001>

<bundles_post_ra>
// kernel: query_generation_forward.1
= control target key start
LH: loop header
LB: loop body
LE: loop exit
PB: predicated region body
PF: predicated region fallthrough
CT: control target
= control target key end

     0   :  { %vm22_vm0 = vcmask 1043456   ;;  %v402_v10 = vmov 2   ;;  %v403_v11 = vmov 1   ;;  %v42_v12 = vlaneseq  ;;  %s406_s19 = smov 96   ;;  %s407_s22 = smov 64   ;;  %s477_s0 = inlined_call_operand.vmem [shape: f32[2,4,256], index: 0, kind: input, shape index: {}]   ;;  %s478_s1 = inlined_call_operand.vmem [shape: f32[16,128], index: 1, kind: input, shape index: {}]   ;;  %s479_s2 = inlined_call_operand.vmem [shape: f32[48,32], index: 2, kind: input, shape index: {}]   ;;  %s480_s3 = inlined_call_operand.vmem [shape: f32[16,32], index: 3, kind: output, shape index: {}]  }
   0x1   :  { %v14_v0 = vld [vmem:[%s477_s0] sm:$0xff]  ;;  %v15_v1 = vld [vmem:[%s477_s0 + $0x8] sm:$0xff]  ;;  %387 = vset.pattern.permute.xlu0 %v402_v10  ;;  %386 = vset.pattern.permute.xlu1 %v403_v11  ;;  %v404_v22 = vmov 3   ;;  %v405_v23 = vmov 0   ;;  %vm156_vm1 = vcmask 261120   ;;  %vm241_vm2 = vcmask 64512  }
   0x2   :  { %v18_v2 = vcombine.high %v14_v0, %v14_v0  ;;  %v23_v3 = vsel %vm22_vm0, %v14_v0, 0.0  ;;  %v19_v4 = vcombine.high %v15_v1, %v15_v1  ;;  %v28_v6 = vsel %vm22_vm0, %v15_v1, 0.0  ;;  %v77_v24 = vld [vmem:[%s478_s1] sm:$0xff]  ;;  %v78_v27 = vld [vmem:[%s478_s1 + $0x8] sm:$0xff]  ;;  %s408_s1 = smov 32  }
   0x3   :  { %v43_v13 = vand.u32 127, %v42_v12  ;;  %v45_v14 = vshrl.u32 %v42_v12, 7  ;;  %v155_v33 = vld [vmem:[%s479_s2 + $0x20] sm:$0xff]  ;;  %v76_v48 = vld [vmem:[%s479_s2 + $0x8] sm:$0xff] }
   0x4   :  { %v24_v5 = vsel %vm22_vm0, %v18_v2, 0.0  ;;  %v29_v7 = vsel %vm22_vm0, %v19_v4, 0.0  ;;  %369 = vmatprep.subr.msk.mxu0 %vm156_vm1, %v155_v33  ;;  %v75_v44 = vld [vmem:[%s479_s2] sm:$0xff]  ;;  %v264_v11 = vld [vmem:[%s479_s2 + $0x28] sm:$0xff] }
   0x5   :  { %v25_v8 = vadd.f32 %v24_v5, %v23_v3  ;;  %v30_v9 = vadd.f32 %v29_v7, %v28_v6  ;;  %v46_v15 = vsub.s32 %v43_v13, %v45_v14  ;;  %370 = vmatpush3.xpose.msk.msra.mxu0 %vm156_vm1, %v155_v33  ;;  %374 = vmatprep.subr.mxu1 %v264_v11 }
   0x6   :  { %375 = vmatpush3.msra.mxu1 %v264_v11 }
   0x7   :  { %26 = vadd.xlane.f32.xlu0 %v25_v8 }
   0xb   :  { %31 = vadd.xlane.f32.xlu0 %v30_v9 }
  0x94   :  { %v27_v16 = vpop.xlane.xlu0 %26 }
  0x95   :  { %v34_v17 = vmul.f32 0.00390625, %v27_v16 }
  0x97   :  { %v47_v18 = vrot.slane %v34_v17, %v46_v15 }
  0x98   :  { %v32_v19 = vpop.xlane.xlu0 %31 }
  0x99   :  { %v35_v20 = vmul.f32 0.00390625, %v32_v19  ;;  %114 = vperm.xlu0 %387, %v47_v18   ;;  %94 = vperm.xlu1 %386, %v47_v18   ;;  %v349_v19 = vld [vmem:[%s479_s2 + $0x18] sm:$0xff] }
  0x9b   :  { %v65_v21 = vrot.slane %v35_v20, %v46_v15 }
  0x9d   :  { %98 = vperm.xlu1 %386, %v65_v21   ;;  %391 = vset.pattern.permute.xlu0 %v404_v22 }
  0xa1   :  { %388 = vset.pattern.permute.xlu1 %v402_v10 }
  0xa2   :  { %118 = vperm.xlu1 %388, %v65_v21  }
  0xa6   :  { %389 = vset.pattern.permute.xlu1 %v404_v22  ;;  %v348_v22 = vld [vmem:[%s479_s2 + $0x10] sm:$0xff] }
  0xa7   :  { %134 = vperm.xlu1 %389, %v47_v18  }
  0xab   :  { %138 = vperm.xlu1 %389, %v65_v21  }
  0xaf   :  { %390 = vset.pattern.permute.xlu1 %v405_v23 }
  0xb0   :  { %81 = vperm.xlu1 %390, %v47_v18  }
  0xb4   :  { %86 = vperm.xlu1 %390, %v65_v21  }
 0x118   :  { %v95_v25 = vpop.permute.xlu1 %94  ;;  %v115_v30 = vpop.permute.xlu0 %114 }
 0x119   :  { %v101_v26 = vmul.f32 %v95_v25, %v77_v24  ;;  %v121_v31 = vmul.f32 %v115_v30, %v77_v24 }
 0x11b   :  { %105 = vrot.lane.b32.xlu1 %v101_v26, %s406_s19 }
 0x11c   :  { %v99_v28 = vpop.permute.xlu1 %98 }
 0x11d   :  { %v102_v29 = vmul.f32 %v99_v28, %v78_v27 }
 0x11f   :  { %107 = vrot.lane.b32.xlu1 %v102_v29, %s406_s19 }
 0x121   :  { %v119_v32 = vpop.permute.xlu1 %118 }
 0x122   :  { %v122_v34 = vmul.f32 %v119_v32, %v78_v27 }
 0x123   :  { %125 = vrot.lane.b32.xlu1 %v121_v31, %s407_s22 }
 0x126   :  { %v135_v35 = vpop.permute.xlu1 %134 }
 0x127   :  { %127 = vrot.lane.b32.xlu1 %v122_v34, %s407_s22  ;;  %v141_v36 = vmul.f32 %v135_v35, %v77_v24 }
 0x12a   :  { %v139_v37 = vpop.permute.xlu1 %138 }
 0x12b   :  { %145 = vrot.lane.b32.xlu1 %v141_v36, %s408_s1  ;;  %v142_v38 = vmul.f32 %v139_v37, %v78_v27 }
 0x12f   :  { %147 = vrot.lane.b32.xlu1 %v142_v38, %s408_s1  ;;  %v82_v39 = vpop.permute.xlu1 %81 }
 0x130   :  { %v89_v43 = vmul.f32 %v82_v39, %v77_v24 }
 0x132   :  { %v91_v47 = vadd.f32 %v89_v43, %v75_v44 }
 0x133   :  { %v87_v40 = vpop.permute.xlu1 %86 }
 0x134   :  { %v90_v46 = vmul.f32 %v87_v40, %v78_v27 }
 0x136   :  { %v92_v51 = vadd.f32 %v90_v46, %v76_v48 }
 0x18d   :  { %v106_v41 = vpop.permute.xlu1 %105 }
 0x18e   :  { %v111_v50 = vadd.f32 %v106_v41, %v91_v47 }
 0x191   :  { %v108_v42 = vpop.permute.xlu1 %107 }
 0x192   :  { %v112_v54 = vadd.f32 %v108_v42, %v92_v51 }
 0x195   :  { %v126_v45 = vpop.permute.xlu1 %125 }
 0x196   :  { %v131_v52 = vadd.f32 %v126_v45, %v111_v50 }
 0x199   :  { %v128_v49 = vpop.permute.xlu1 %127 }
 0x19a   :  { %v132_v56 = vadd.f32 %v128_v49, %v112_v54 }
 0x19d   :  { %v146_v53 = vpop.permute.xlu1 %145 }
 0x19e   :  { %v151_v55 = vadd.f32 %v146_v53, %v131_v52 }
 0x1a0   :  { %v153_v57 = vmax.f32 %v151_v55, 0.0 }
 0x1a1   :  { %v148_v58 = vpop.permute.xlu1 %147 }
 0x1a2   :  { %v152_v59 = vadd.f32 %v148_v58, %v132_v56  ;;  %371 = vmatprep.mubr.msk.f32.mxu0 %vm156_vm1, %v153_v57 }
 0x1a4   :  { %v154_v60 = vmax.f32 %v152_v59, 0.0 }
 0x1a6   :  { %372 = vmatmul.mubr.msk.f32.vlgmr.msra.gmra.mrb[0].mxu0 %vm156_vm1, %v154_v60 }
 0x279   :  { %v373_v61 = vpop.f32.mrb[0].mxu0 }
 0x27a   :  { %v232_v62 = vpop.f32.mrb[1].mxu0  ;;  %v245_v63 = vsel %vm241_vm2, %v373_v61, -inf }
 0x27b   :  { %246 = vmax.xlane.f32.xlu1 %v245_v63  ;;  %v242_v0 = vsel %vm241_vm2, %v232_v62, -inf }
 0x27c   :  { %243 = vmax.xlane.f32.xlu0 %v242_v0 }
 0x308   :  { %v247_v1 = vpop.xlane.xlu1 %246 }
 0x309   :  { %v249_v2 = vsub.f32 %v373_v61, %v247_v1  ;;  %v244_v3 = vpop.xlane.xlu0 %243 }
 0x30a   :  { %v248_v4 = vsub.f32 %v232_v62, %v244_v3 }
 0x30b   :  { %v252_v5 = vmul.f32 1.442695, %v249_v2 }
 0x30c   :  { %v250_v6 = vmul.f32 1.442695, %v248_v4 }
 0x30e   :  { %394 = vpow2.f32 %v250_v6 }
 0x30f   :  { %396 = vpow2.f32 %v252_v5 }
 0x318   :  { %v395_v7 = vpop.eup %394 }
 0x319   :  { %v254_v8 = vsel %vm241_vm2, %v395_v7, 0.0  ;;  %v397_v9 = vpop.eup %396 }
 0x31a   :  { %255 = vadd.xlane.f32.xlu0 %v254_v8  ;;  %v257_v10 = vsel %vm241_vm2, %v397_v9, 0.0 }
 0x31e   :  { %258 = vadd.xlane.f32.xlu0 %v257_v10 }
 0x3a7   :  { %v256_v12 = vpop.xlane.xlu0 %255 }
 0x3a8   :  { %398 = vrcp.f32 %v256_v12 }
 0x3ab   :  { %v259_v13 = vpop.xlane.xlu0 %258 }
 0x3ac   :  { %400 = vrcp.f32 %v259_v13 }
 0x3b2   :  { %v399_v14 = vpop.eup %398 }
 0x3b3   :  { %v261_v15 = vmul.f32 %v399_v14, %v395_v7 }
 0x3b5   :  { %376 = vmatprep.mubr.msk.f32.mxu1 %vm241_vm2, %v261_v15 }
 0x3b6   :  { %v401_v16 = vpop.eup %400 }
 0x3b7   :  { %v263_v17 = vmul.f32 %v401_v16, %v397_v9 }
 0x3b9   :  { %377 = vmatmul.mubr.msk.f32.vlgmr.msra.gmra.mrb[0].mxu1 %vm241_vm2, %v263_v17 }
 0x48c   :  { %v378_v18 = vpop.f32.mrb[0].mxu1 }
 0x48d   :  { %v347_v20 = vmax.f32 %v378_v18, 0.0  ;;  %v337_v21 = vpop.f32.mrb[1].mxu1 }
 0x48e   :  { %v346_v23 = vmax.f32 %v337_v21, 0.0 }
 0x48f   :  { %v351_v24 = vadd.f32 %v349_v19, %v347_v20 }
 0x490   :  { %v350_v25 = vadd.f32 %v348_v22, %v346_v23 }
 0x491   :  { %353 = vst.msk [vmem:[%s480_s3 + $0x8] sm:$0xff] %vm156_vm1, %v351_v24 }
 0x492   :  { %352 = vst.msk [vmem:[%s480_s3] sm:$0xff] %vm156_vm1, %v350_v25 }

</bundles_post_ra>
